<compile_context>
chip_gen: v5e
topology: v5e:2x2
jax: 0.10.0
libtpu: 0.0.40
codegen_flags: <defaults>
</compile_context>

<pallas_src>
import functools
import math

import jax
import jax.numpy as jnp
from jax.experimental import pallas as pl
from jax.experimental.pallas import tpu as pltpu


def _rope_kernel(offset_ref, out_ref, *, dim, neg_ln_base):
    """Write emb[r, :] = cat(pos_r * inv_freq, pos_r * inv_freq) for one seq tile.

    offset_ref: (1,) int32 in SMEM (scalar prefetch)
    out_ref:    (tile_seq, dim) f32 in VMEM
    """
    tile_seq = out_ref.shape[0]
    half = dim // 2

    # Tile start position along the sequence axis.
    start = offset_ref[0] + pl.program_id(0) * tile_seq

    # Integer positions (exact for any context length), cast once to f32.
    pos = (jax.lax.broadcasted_iota(jnp.int32, (tile_seq, 1), 0) + start).astype(
        jnp.float32
    )

    # Full-width inv_freq row with the duplicated halves baked in:
    #   lane j -> exponent (j mod half) -> inv_freq[j mod half]
    # exp() is a single (1, dim) row on the otherwise-idle EUP slot.
    col = jax.lax.broadcasted_iota(jnp.int32, (1, dim), 1)
    k = jnp.where(col < half, col, col - half).astype(jnp.float32)
    inv_freq = jnp.exp(k * (2.0 / dim) * neg_ln_base)  # (1, dim) f32

    # emb = cat(freqs, freqs) materialized as one lane-dense full-width store.
    out_ref[...] = pos * inv_freq


def _round_up(x, m):
    return ((x + m - 1) // m) * m


@functools.lru_cache(maxsize=None)
def _build_rope_call(seq, dim, neg_ln_base):
    """Build (and cache) a jitted pallas_call for a given (seq, dim, base)."""
    # 1024-row tiles: 2x double-buffered output tiles are <= 1 MiB each at
    # dim<=256 f32, comfortably inside v7x's 32 MiB scoped VMEM (64 MiB phys),
    # while being large enough (>512 rows) to sit near the HBM store roofline.
    tile_seq = min(1024, _round_up(seq, 8))
    grid = (pl.cdiv(seq, tile_seq),)

    kernel = functools.partial(_rope_kernel, dim=dim, neg_ln_base=neg_ln_base)

    call = pl.pallas_call(
        kernel,
        out_shape=jax.ShapeDtypeStruct((seq, dim), jnp.float32),
        grid_spec=pltpu.PrefetchScalarGridSpec(
            num_scalar_prefetch=1,  # offset -> SMEM; no recompile per offset
            grid=grid,
            in_specs=[],
            out_specs=pl.BlockSpec((tile_seq, dim), lambda i, off: (i, 0)),
        ),
        compiler_params=pltpu.CompilerParams(
            # Tiles are independent: split across both v7x TensorCores
            # (harmless no-op on single-TC v5e/v6e).
            dimension_semantics=("parallel",),
        ),
    )
    return jax.jit(call)


class RotaryEmbedding:
    """JAX/Pallas port of the PyTorch RotaryEmbedding module."""

    def __init__(self, dim, base=10000, ntk_alpha=1.0):
        assert dim % 2 == 0, "dim must be even"
        self.dim = dim
        base_adj = base * ntk_alpha ** (dim / (dim - 2))
        # inv_freq = exp(-(2k/dim) * ln(base_adj)) is computed in-kernel.
        self._neg_ln_base = -math.log(base_adj)

    def __call__(self, max_seq_len, offset=0):
        seq = int(max_seq_len)
        call = _build_rope_call(seq, self.dim, self._neg_ln_base)
        # offset travels as data (SMEM scalar), not as a trace constant.
        emb = call(jnp.array([int(offset)], dtype=jnp.int32))
        # rearrange 'n d -> 1 n 1 d'; positions already start at `offset`, so no
        # extra slice is needed.
        return emb.reshape(1, seq, 1, self.dim)


def _reference(dim, base, ntk_alpha, max_seq_len, offset):
    b = base * ntk_alpha ** (dim / (dim - 2))
    inv_freq = 1.0 / (b ** (jnp.arange(0, dim, 2, dtype=jnp.float32) / dim))
    seqlen = max_seq_len + offset
    seq = jnp.arange(seqlen, dtype=jnp.float32)
    freqs = jnp.outer(seq, inv_freq)
    emb = jnp.concatenate([freqs, freqs], axis=-1)
    emb = emb.reshape(1, seqlen, 1, dim)
    return emb[:, offset:offset + max_seq_len]


if __name__ == "__main__":
    # Forward takes only integer arguments; parameters are deterministic.
    _ = jax.random.PRNGKey(0)  # no tensor inputs needed for this module

    dim = 32
    rope = RotaryEmbedding(dim=dim, base=10000, ntk_alpha=1.0)

    # Small case (single tile).
    max_seq_len, offset = 8, 0
    out = jax.block_until_ready(rope(max_seq_len, offset=offset))
    ref = _reference(dim, 10000, 1.0, max_seq_len, offset)
    assert out.shape == (1, max_seq_len, 1, dim), out.shape
    assert out.dtype == jnp.float32
    assert jnp.allclose(out, ref, rtol=1e-5, atol=1e-5), "mismatch vs reference (small)"

    # Non-zero offset reuses the SAME compiled kernel (offset is SMEM data).
    out2 = jax.block_until_ready(rope(max_seq_len, offset=5))
    ref2 = _reference(dim, 10000, 1.0, max_seq_len, 5)
    assert jnp.allclose(out2, ref2, rtol=1e-5, atol=1e-5), "mismatch vs reference (offset)"

    # Multi-tile case with a partial last block (exercises the tiled grid path).
    out3 = jax.block_until_ready(rope(2050, offset=7))
    ref3 = _reference(dim, 10000, 1.0, 2050, 7)
    assert out3.shape == (1, 2050, 1, dim)
    assert jnp.allclose(out3, ref3, rtol=1e-5, atol=1e-5), "mismatch vs reference (tiled)"

    print("KERNEL_OK")
</pallas_src>

<mosaic_0001>
module attributes {stable_mosaic.version = 11 : i64} {
  func.func @_rope_kernel(%arg0: i32, %arg1: memref<1xi32, #tpu.memory_space<smem>>, %arg2: memref<8x32xf32, #tpu.memory_space<vmem>>) attributes {dimension_semantics = [#tpu.dimension_semantics<parallel>], iteration_bounds = array<i64: 1>, scalar_prefetch = 1 : i64, scratch_operands = 0 : i64, tpu.core_type = #tpu.core_type<tc>, window_params = [{transform_indices = @transform_0, window_bounds = array<i64: 8, 32>}]} {
    %c0 = arith.constant 0 : index
    %0 = memref.load %arg1[%c0] : memref<1xi32, #tpu.memory_space<smem>>
    %c8_i32 = arith.constant 8 : i32
    %1 = arith.muli %arg0, %c8_i32 : i32
    %2 = arith.addi %0, %1 : i32
    %3 = tpu.iota {dimensions = array<i32: 0>} : vector<8x1xi32>
    %4 = vector.broadcast %2 : i32 to vector<8x1xi32>
    %5 = arith.addi %3, %4 : vector<8x1xi32>
    %6 = arith.sitofp %5 : vector<8x1xi32> to vector<8x1xf32>
    %7 = tpu.iota {dimensions = array<i32: 1>} : vector<1x32xi32>
    %c16_i32 = arith.constant 16 : i32
    %8 = vector.broadcast %c16_i32 : i32 to vector<1x32xi32>
    %9 = arith.cmpi slt, %7, %8 : vector<1x32xi32>
    %c16_i32_0 = arith.constant 16 : i32
    %10 = vector.broadcast %c16_i32_0 : i32 to vector<1x32xi32>
    %11 = arith.subi %7, %10 : vector<1x32xi32>
    %12 = arith.select %9, %7, %11 : vector<1x32xi1>, vector<1x32xi32>
    %13 = arith.sitofp %12 : vector<1x32xi32> to vector<1x32xf32>
    %cst = arith.constant 6.250000e-02 : f32
    %14 = vector.broadcast %cst : f32 to vector<1x32xf32>
    %15 = arith.mulf %13, %14 : vector<1x32xf32>
    %cst_1 = arith.constant -9.21034049 : f32
    %16 = vector.broadcast %cst_1 : f32 to vector<1x32xf32>
    %17 = arith.mulf %15, %16 : vector<1x32xf32>
    %18 = math.exp %17 : vector<1x32xf32>
    %19 = vector.broadcast %6 : vector<8x1xf32> to vector<8x32xf32>
    %20 = vector.broadcast %18 : vector<1x32xf32> to vector<8x32xf32>
    %21 = arith.mulf %19, %20 : vector<8x32xf32>
    %c0_2 = arith.constant 0 : index
    %c0_3 = arith.constant 0 : index
    %22 = vector.load %arg2[%c0_2, %c0_3] : memref<8x32xf32, #tpu.memory_space<vmem>>, vector<8x32xf32>
    tpu.vector_store %arg2[%c0_2, %c0_3], %21 {strides = array<i32>} : memref<8x32xf32, #tpu.memory_space<vmem>>, vector<8x32xf32>,
    return
  }
  func.func @transform_0(%arg0: i32, %arg1: memref<1xi32, #tpu.memory_space<smem>>) -> (i32, i32) {
    %c0_i32 = arith.constant 0 : i32
    %c0_i32_0 = arith.constant 0 : i32
    return %arg0, %c0_i32 : i32, i32
  }
}

</mosaic_0001>

<bundles_post_ra>
// kernel: tpu_custom_call.1
= control target key start
LH: loop header
LB: loop body
LE: loop exit
PB: predicated region body
PF: predicated region fallthrough
CT: control target
= control target key end

     0   :  { %v11_v0 = vlaneseq  ;;  %s92_s0 = inlined_call_operand.<no memory space> [shape: s32[1], index: 0, kind: input, shape index: {}]   ;;  %s93_s1 = inlined_call_operand.hbm [shape: f32[8,32], index: 1, kind: output, shape index: {}]  }
   0x1   :  { %7 = vsyncpa [#allocation5], 0  ;;  %v13_v7 = vstv %s92_s0  ;;  %s75_s8 = smov [#allocation4]   ;;  %s36_s12 = sshll.u32 %s93_s1, 4  ;;  %vm27_vm1 = vcmask 261120   ;;  %s37_s12 = int_to_ptr.hbm [resolvable:$true] %s36_s12 }
   0x2   :  { %v17_v1 = vand.u32 127, %v11_v0  ;;  %v12_v6 = vshrl.u32 %v11_v0, 7  ;;  %s34_s9 = sshll.u32 %s75_s8, 4  ;;  %s35_s9 = int_to_ptr.vmem [resolvable:$true] %s34_s9 }
   0x4   :  { %vm18_vm0 = vcmp.lt.s32.totalorder %v17_v1, 16  ;;  %v45_v2 = vadd.s32 4294967280, %v17_v1  ;;  %v14_v10 = vadd.s32 %v13_v7, %v12_v6 }
   0x6   :  { %v20_v3 = vsel %vm18_vm0, %v17_v1, %v45_v2  ;;  %v15_v11 = vcvt.s32.f32 %v14_v10 }
   0x7   :  { %v21_v4 = vcvt.s32.f32 %v20_v3 }
   0x9   :  { %v22_v5 = vmul.f32 0.0625, %v21_v4 }
   0xb   :  { %v23_v8 = vmul.f32 -9.2103405, %v22_v5 }
   0xd   :  { %v24_v9 = vmul.f32 1.442695, %v23_v8 }
   0xf   :  { %47 = vpow2.f32 %v24_v9 }
  0x15   :  { %v48_v12 = vpop.eup %47 }
  0x16   :  { %v26_v13 = vmul.f32 %v48_v12, %v15_v11 }
  0x18   :  { %28 = vst.msk [vmem:[#allocation4] sm:$0xff] %vm27_vm1, %v26_v13 }
  0x19   :  { %39 = dma.vmem_to_hbm [thread:$0]  %s35_s9, 128, %s37_s12, [#allocation5]  }
  0x1a   :  { %73 = dma.done.wait [#allocation5], 128  }
  0x1b   :  { %74 = vsyncadd [#allocation5], 4294967168 }
  0x1c   :  { %44 = vsyncpa [#allocation5], 1 }

</bundles_post_ra>
